<compile_context>
chip_gen: v5e
topology: v5e:2x2
jax: 0.10.0
libtpu: 0.0.40
codegen_flags: <defaults>
</compile_context>

<pallas_src>
import jax
import jax.numpy as jnp
import numpy as np
from jax import lax
from jax.experimental import pallas as pl
from jax.experimental.pallas import tpu as pltpu


def _round_up(x, m):
    return (x + m - 1) // m * m


def _pad2(a, rows, cols):
    """Zero-pad a 2-D array up to (rows, cols)."""
    return jnp.zeros((rows, cols), a.dtype).at[:a.shape[0], :a.shape[1]].set(a)


# --------------------------------------------------------------------------
# Shared per-step cell: linear1 + relu -> LSTMCell -> linear2
# (all operands already padded; padded weight rows/cols are zero so the
#  padded lanes contribute nothing to the true outputs)
# --------------------------------------------------------------------------
def _decoder_cell(x, h, c, w1, b1, wih, whh, bl, w2, b2):
    hp = whh.shape[0]  # lane-padded hidden width (multiple of 128)

    # embedded = relu(linear1(x))
    emb = jnp.maximum(jnp.dot(x, w1, preferred_element_type=jnp.float32) + b1, 0.0)

    # LSTM gate pre-activations: two MXU dots, no VMEM scratch bounce.
    gates = (jnp.dot(emb, wih, preferred_element_type=jnp.float32)
             + jnp.dot(h, whh, preferred_element_type=jnp.float32)
             + bl)

    def sig(v):  # sigmoid via tanh identity: one EUP transcendental
        return 0.5 * jnp.tanh(0.5 * v) + 0.5

    # PyTorch gate order [i, f, g, o]; every block is a full 128-lane tile.
    i_g = sig(gates[:, 0 * hp:1 * hp])
    f_g = sig(gates[:, 1 * hp:2 * hp])
    g_g = jnp.tanh(gates[:, 2 * hp:3 * hp])
    o_g = sig(gates[:, 3 * hp:4 * hp])

    c_new = f_g * c + i_g * g_g
    h_new = o_g * jnp.tanh(c_new)

    out = jnp.dot(h_new, w2, preferred_element_type=jnp.float32) + b2
    return out, h_new, c_new


# --------------------------------------------------------------------------
# Kernels
# --------------------------------------------------------------------------
def _decoder_step_kernel(x_ref, h_ref, c_ref, w1_ref, b1_ref, wih_ref, whh_ref,
                         bl_ref, w2_ref, b2_ref, out_ref, h_out_ref, c_out_ref):
    out, h_new, c_new = _decoder_cell(
        x_ref[...], h_ref[...], c_ref[...],
        w1_ref[...], b1_ref[...], wih_ref[...], whh_ref[...], bl_ref[...],
        w2_ref[...], b2_ref[...])
    out_ref[...] = out
    h_out_ref[...] = h_new
    c_out_ref[...] = c_new


def _decoder_rollout_kernel(x0_ref, h0_ref, c0_ref, w1_ref, b1_ref, wih_ref,
                            whh_ref, bl_ref, w2_ref, b2_ref,
                            seq_ref, h_out_ref, c_out_ref):
    # Weights/biases loaded once; they stay in vregs / VMEM across all steps.
    w1, b1 = w1_ref[...], b1_ref[...]
    wih, whh, bl = wih_ref[...], whh_ref[...], bl_ref[...]
    w2, b2 = w2_ref[...], b2_ref[...]
    num_steps = seq_ref.shape[0]

    def step(t, carry):
        x, h, c = carry
        out, h_new, c_new = _decoder_cell(x, h, c, w1, b1, wih, whh, bl, w2, b2)
        seq_ref[t] = out            # resident VMEM slab; one HBM writeback at end
        return out, h_new, c_new    # autoregressive: next input = this output

    _, h_fin, c_fin = lax.fori_loop(
        0, num_steps, step,
        (x0_ref[...], h0_ref[...], c0_ref[...]),
        unroll=num_steps <= 16)

    h_out_ref[...] = h_fin
    c_out_ref[...] = c_fin


# --------------------------------------------------------------------------
# One-time parameter packer
# --------------------------------------------------------------------------
def pack_params(params, batch, lane=128, sublane=8):
    """Transpose, merge biases, pre-broadcast biases over padded batch, and
    pad every feature dim (and each LSTM gate block) to the 128-lane tile."""
    f32 = jnp.float32
    w1_t = jnp.asarray(params["w1"], f32).T       # (O, E)
    wih_t = jnp.asarray(params["w_ih"], f32).T    # (E, 4H)
    whh_t = jnp.asarray(params["w_hh"], f32).T    # (H, 4H)
    w2_t = jnp.asarray(params["w2"], f32).T       # (H, O)
    O, E = w1_t.shape
    H = whh_t.shape[0]

    BP = _round_up(batch, sublane)
    OP = _round_up(O, lane)
    EP = _round_up(E, lane)
    HP = _round_up(H, lane)

    w1p = jnp.zeros((OP, EP), f32).at[:O, :E].set(w1_t)
    b1p = jnp.zeros((BP, EP), f32).at[:, :E].set(
        jnp.broadcast_to(jnp.asarray(params["b1"], f32), (BP, E)))

    wihp = jnp.zeros((EP, 4 * HP), f32)
    whhp = jnp.zeros((HP, 4 * HP), f32)
    blp = jnp.zeros((BP, 4 * HP), f32)
    b_sum = jnp.asarray(params["b_ih"], f32) + jnp.asarray(params["b_hh"], f32)
    for g in range(4):
        wihp = wihp.at[:E, g * HP:g * HP + H].set(wih_t[:, g * H:(g + 1) * H])
        whhp = whhp.at[:H, g * HP:g * HP + H].set(whh_t[:, g * H:(g + 1) * H])
        blp = blp.at[:, g * HP:g * HP + H].set(
            jnp.broadcast_to(b_sum[g * H:(g + 1) * H], (BP, H)))

    w2p = jnp.zeros((HP, OP), f32).at[:H, :O].set(w2_t)
    b2p = jnp.zeros((BP, OP), f32).at[:, :O].set(
        jnp.broadcast_to(jnp.asarray(params["b2"], f32), (BP, O)))

    return {"w1": w1p, "b1": b1p, "wih": wihp, "whh": whhp, "bl": blp,
            "w2": w2p, "b2": b2p,
            "dims": {"B": batch, "O": O, "E": E, "H": H,
                     "BP": BP, "OP": OP, "EP": EP, "HP": HP}}


def _weight_args(packed):
    return (packed["w1"], packed["b1"], packed["wih"], packed["whh"],
            packed["bl"], packed["w2"], packed["b2"])


# --------------------------------------------------------------------------
# Wrappers
# --------------------------------------------------------------------------
def decoder_rnn_forward(x, hidden, packed):
    """Pallas equivalent of DecoderRNN.forward(x, hidden) -> (output, (h, c)).
    Single-step / debug path; autoregressive decode should use
    decoder_rnn_rollout (one launch, weights DMA'd once)."""
    h0, c0 = hidden
    d = packed["dims"]
    B, O, H = x.shape[0], x.shape[1], h0.shape[1]
    BP, OP, EP, HP = d["BP"], d["OP"], d["EP"], d["HP"]

    x_p = _pad2(x.astype(jnp.float32), BP, OP)
    h_p = _pad2(h0.astype(jnp.float32), BP, HP)
    c_p = _pad2(c0.astype(jnp.float32), BP, HP)

    args = (x_p, h_p, c_p) + _weight_args(packed)
    vmem = pl.BlockSpec(memory_space=pltpu.MemorySpace.VMEM)

    flops = 2 * BP * (OP * EP + EP * 4 * HP + HP * 4 * HP + HP * OP)
    transcendentals = 5 * BP * HP
    bytes_accessed = 4 * (sum(int(np.prod(a.shape)) for a in args)
                          + BP * (OP + 2 * HP))

    out, h_new, c_new = pl.pallas_call(
        _decoder_step_kernel,
        out_shape=(jax.ShapeDtypeStruct((BP, OP), jnp.float32),
                   jax.ShapeDtypeStruct((BP, HP), jnp.float32),
                   jax.ShapeDtypeStruct((BP, HP), jnp.float32)),
        in_specs=[vmem] * len(args),
        out_specs=(vmem, vmem, vmem),
        cost_estimate=pl.CostEstimate(flops=flops,
                                      transcendentals=transcendentals,
                                      bytes_accessed=bytes_accessed),
    )(*args)
    return out[:B, :O], (h_new[:B, :H], c_new[:B, :H])


def decoder_rnn_rollout(x0, hidden, packed, num_steps):
    """num_steps autoregressive DecoderRNN.forward() calls fused into ONE
    pallas_call: the time loop is a lax.fori_loop inside the kernel body,
    weights are DMA'd to VMEM once, (x, h, c) are vreg-resident carries and
    the lane-dense sequence buffer is written back to HBM once."""
    h0, c0 = hidden
    d = packed["dims"]
    B, O, H = x0.shape[0], x0.shape[1], h0.shape[1]
    BP, OP, EP, HP = d["BP"], d["OP"], d["EP"], d["HP"]

    x_p = _pad2(x0.astype(jnp.float32), BP, OP)
    h_p = _pad2(h0.astype(jnp.float32), BP, HP)
    c_p = _pad2(c0.astype(jnp.float32), BP, HP)

    args = (x_p, h_p, c_p) + _weight_args(packed)
    vmem = pl.BlockSpec(memory_space=pltpu.MemorySpace.VMEM)

    flops = 2 * BP * (OP * EP + EP * 4 * HP + HP * 4 * HP + HP * OP) * num_steps
    transcendentals = 5 * BP * HP * num_steps
    bytes_accessed = 4 * (sum(int(np.prod(a.shape)) for a in args)
                          + num_steps * BP * OP + 2 * BP * HP)

    # TODO(synk): for very large num_steps, chunk the resident seq buffer over
    # a time grid (blocks of a few hundred steps) to bound VMEM on v7x (64 MiB).
    # TODO(synk): on v7x, add a batch-parallel grid axis (after padding B per
    # shard to >=8) so the second TensorCore runs an independent batch shard.
    seq, h_new, c_new = pl.pallas_call(
        _decoder_rollout_kernel,
        out_shape=(jax.ShapeDtypeStruct((num_steps, BP, OP), jnp.float32),
                   jax.ShapeDtypeStruct((BP, HP), jnp.float32),
                   jax.ShapeDtypeStruct((BP, HP), jnp.float32)),
        in_specs=[vmem] * len(args),
        out_specs=(vmem, vmem, vmem),
        cost_estimate=pl.CostEstimate(flops=flops,
                                      transcendentals=transcendentals,
                                      bytes_accessed=bytes_accessed),
    )(*args)
    return seq[:, :B, :O], (h_new[:B, :H], c_new[:B, :H])


# --------------------------------------------------------------------------
# Parameters + pure-JAX references
# --------------------------------------------------------------------------
def init_params(key, embedding_size=8, hidden_size=16, output_size=2):
    """Deterministic synthetic parameters with PyTorch-shaped weights."""
    ks = jax.random.split(key, 8)

    def uni(k, shape, fan_in):
        bound = 1.0 / np.sqrt(fan_in)
        return jax.random.uniform(k, shape, jnp.float32, -bound, bound)

    return {
        "w1": uni(ks[0], (embedding_size, output_size), output_size),
        "b1": uni(ks[1], (embedding_size,), output_size),
        "w_ih": uni(ks[2], (4 * hidden_size, embedding_size), hidden_size),
        "w_hh": uni(ks[3], (4 * hidden_size, hidden_size), hidden_size),
        "b_ih": uni(ks[4], (4 * hidden_size,), hidden_size),
        "b_hh": uni(ks[5], (4 * hidden_size,), hidden_size),
        "w2": uni(ks[6], (output_size, hidden_size), hidden_size),
        "b2": uni(ks[7], (output_size,), hidden_size),
    }


def decoder_rnn_reference(x, hidden, params):
    """Pure-JAX reference mirroring the PyTorch forward exactly."""
    h, c = hidden
    H = h.shape[1]
    emb = jax.nn.relu(x @ params["w1"].T + params["b1"])
    gates = (emb @ params["w_ih"].T + params["b_ih"]
             + h @ params["w_hh"].T + params["b_hh"])
    i_g = jax.nn.sigmoid(gates[:, 0 * H:1 * H])
    f_g = jax.nn.sigmoid(gates[:, 1 * H:2 * H])
    g_g = jnp.tanh(gates[:, 2 * H:3 * H])
    o_g = jax.nn.sigmoid(gates[:, 3 * H:4 * H])
    c_new = f_g * c + i_g * g_g
    h_new = o_g * jnp.tanh(c_new)
    out = h_new @ params["w2"].T + params["b2"]
    return out, (h_new, c_new)


def decoder_rnn_rollout_reference(x0, hidden, params, num_steps):
    x, (h, c) = x0, hidden
    outs = []
    for _ in range(num_steps):
        x, (h, c) = decoder_rnn_reference(x, (h, c), params)
        outs.append(x)
    return jnp.stack(outs, axis=0), (h, c)


if __name__ == "__main__":
    embedding_size, hidden_size, output_size = 8, 16, 2
    batch, num_steps = 4, 6

    key = jax.random.PRNGKey(0)
    k_params, k_x, k_h, k_c = jax.random.split(key, 4)

    params = init_params(k_params, embedding_size, hidden_size, output_size)
    packed = pack_params(params, batch)

    x = jax.random.normal(k_x, (batch, output_size), jnp.float32)
    h0 = jax.random.normal(k_h, (batch, hidden_size), jnp.float32)
    c0 = jax.random.normal(k_c, (batch, hidden_size), jnp.float32)

    # Single step: matches DecoderRNN.forward(x, hidden) exactly.
    out, (h_new, c_new) = decoder_rnn_forward(x, (h0, c0), packed)
    jax.block_until_ready((out, h_new, c_new))

    ref_out, (ref_h, ref_c) = decoder_rnn_reference(x, (h0, c0), params)
    np.testing.assert_allclose(np.asarray(out), np.asarray(ref_out), rtol=1e-5, atol=1e-5)
    np.testing.assert_allclose(np.asarray(h_new), np.asarray(ref_h), rtol=1e-5, atol=1e-5)
    np.testing.assert_allclose(np.asarray(c_new), np.asarray(ref_c), rtol=1e-5, atol=1e-5)

    # Multi-step autoregressive rollout fused into one kernel launch.
    seq, (hT, cT) = decoder_rnn_rollout(x, (h0, c0), packed, num_steps)
    jax.block_until_ready((seq, hT, cT))

    ref_seq, (ref_hT, ref_cT) = decoder_rnn_rollout_reference(x, (h0, c0), params, num_steps)
    np.testing.assert_allclose(np.asarray(seq), np.asarray(ref_seq), rtol=1e-4, atol=1e-4)
    np.testing.assert_allclose(np.asarray(hT), np.asarray(ref_hT), rtol=1e-4, atol=1e-4)
    np.testing.assert_allclose(np.asarray(cT), np.asarray(ref_cT), rtol=1e-4, atol=1e-4)

    print("KERNEL_OK")
</pallas_src>

<mosaic_0001>
module attributes {stable_mosaic.version = 11 : i64} {
  func.func @_decoder_step_kernel(%arg0: memref<8x128xf32, #tpu.memory_space<vmem>>, %arg1: memref<8x128xf32, #tpu.memory_space<vmem>>, %arg2: memref<8x128xf32, #tpu.memory_space<vmem>>, %arg3: memref<128x128xf32, #tpu.memory_space<vmem>>, %arg4: memref<8x128xf32, #tpu.memory_space<vmem>>, %arg5: memref<128x512xf32, #tpu.memory_space<vmem>>, %arg6: memref<128x512xf32, #tpu.memory_space<vmem>>, %arg7: memref<8x512xf32, #tpu.memory_space<vmem>>, %arg8: memref<128x128xf32, #tpu.memory_space<vmem>>, %arg9: memref<8x128xf32, #tpu.memory_space<vmem>>, %arg10: memref<8x128xf32, #tpu.memory_space<vmem>>, %arg11: memref<8x128xf32, #tpu.memory_space<vmem>>, %arg12: memref<8x128xf32, #tpu.memory_space<vmem>>) attributes {dimension_semantics = [], scalar_prefetch = 0 : i64, scratch_operands = 0 : i64, tpu.core_type = #tpu.core_type<tc>} {
    %c0 = arith.constant 0 : index
    %c0_0 = arith.constant 0 : index
    %0 = vector.load %arg0[%c0, %c0_0] : memref<8x128xf32, #tpu.memory_space<vmem>>, vector<8x128xf32>
    %c0_1 = arith.constant 0 : index
    %c0_2 = arith.constant 0 : index
    %1 = vector.load %arg1[%c0_1, %c0_2] : memref<8x128xf32, #tpu.memory_space<vmem>>, vector<8x128xf32>
    %c0_3 = arith.constant 0 : index
    %c0_4 = arith.constant 0 : index
    %2 = vector.load %arg2[%c0_3, %c0_4] : memref<8x128xf32, #tpu.memory_space<vmem>>, vector<8x128xf32>
    %c0_5 = arith.constant 0 : index
    %c0_6 = arith.constant 0 : index
    %3 = vector.load %arg3[%c0_5, %c0_6] : memref<128x128xf32, #tpu.memory_space<vmem>>, vector<128x128xf32>
    %c0_7 = arith.constant 0 : index
    %c0_8 = arith.constant 0 : index
    %4 = vector.load %arg4[%c0_7, %c0_8] : memref<8x128xf32, #tpu.memory_space<vmem>>, vector<8x128xf32>
    %c0_9 = arith.constant 0 : index
    %c0_10 = arith.constant 0 : index
    %5 = vector.load %arg5[%c0_9, %c0_10] : memref<128x512xf32, #tpu.memory_space<vmem>>, vector<128x512xf32>
    %c0_11 = arith.constant 0 : index
    %c0_12 = arith.constant 0 : index
    %6 = vector.load %arg6[%c0_11, %c0_12] : memref<128x512xf32, #tpu.memory_space<vmem>>, vector<128x512xf32>
    %c0_13 = arith.constant 0 : index
    %c0_14 = arith.constant 0 : index
    %7 = vector.load %arg7[%c0_13, %c0_14] : memref<8x512xf32, #tpu.memory_space<vmem>>, vector<8x512xf32>
    %c0_15 = arith.constant 0 : index
    %c0_16 = arith.constant 0 : index
    %8 = vector.load %arg8[%c0_15, %c0_16] : memref<128x128xf32, #tpu.memory_space<vmem>>, vector<128x128xf32>
    %c0_17 = arith.constant 0 : index
    %c0_18 = arith.constant 0 : index
    %9 = vector.load %arg9[%c0_17, %c0_18] : memref<8x128xf32, #tpu.memory_space<vmem>>, vector<8x128xf32>
    %cst = arith.constant dense<0.000000e+00> : vector<8x128xf32>
    %10 = tpu.matmul %0, %3, %cst {dimension_numbers = #tpu.dot_dimension_numbers<[1], [0], [0], [1], [0, 0, 1, 1], [], []>} : vector<8x128xf32>, vector<128x128xf32>, vector<8x128xf32> -> vector<8x128xf32>
    %11 = arith.addf %10, %4 : vector<8x128xf32>
    %cst_19 = arith.constant 0.000000e+00 : f32
    %12 = vector.broadcast %cst_19 : f32 to vector<8x128xf32>
    %13 = arith.maximumf %11, %12 : vector<8x128xf32>
    %cst_20 = arith.constant dense<0.000000e+00> : vector<8x512xf32>
    %14 = tpu.matmul %13, %5, %cst_20 {dimension_numbers = #tpu.dot_dimension_numbers<[1], [0], [0], [1], [0, 0, 1, 1], [], []>} : vector<8x128xf32>, vector<128x512xf32>, vector<8x512xf32> -> vector<8x512xf32>
    %cst_21 = arith.constant dense<0.000000e+00> : vector<8x512xf32>
    %15 = tpu.matmul %1, %6, %cst_21 {dimension_numbers = #tpu.dot_dimension_numbers<[1], [0], [0], [1], [0, 0, 1, 1], [], []>} : vector<8x128xf32>, vector<128x512xf32>, vector<8x512xf32> -> vector<8x512xf32>
    %16 = arith.addf %14, %15 : vector<8x512xf32>
    %17 = arith.addf %16, %7 : vector<8x512xf32>
    %18 = vector.extract_strided_slice %17 {offsets = [0, 0], sizes = [8, 128], strides = [1, 1]} : vector<8x512xf32> to vector<8x128xf32>
    %cst_22 = arith.constant 5.000000e-01 : f32
    %19 = vector.broadcast %cst_22 : f32 to vector<8x128xf32>
    %20 = arith.mulf %19, %18 : vector<8x128xf32>
    %21 = math.tanh %20 : vector<8x128xf32>
    %cst_23 = arith.constant 5.000000e-01 : f32
    %22 = vector.broadcast %cst_23 : f32 to vector<8x128xf32>
    %23 = arith.mulf %22, %21 : vector<8x128xf32>
    %cst_24 = arith.constant 5.000000e-01 : f32
    %24 = vector.broadcast %cst_24 : f32 to vector<8x128xf32>
    %25 = arith.addf %23, %24 : vector<8x128xf32>
    %26 = vector.extract_strided_slice %17 {offsets = [0, 128], sizes = [8, 128], strides = [1, 1]} : vector<8x512xf32> to vector<8x128xf32>
    %cst_25 = arith.constant 5.000000e-01 : f32
    %27 = vector.broadcast %cst_25 : f32 to vector<8x128xf32>
    %28 = arith.mulf %27, %26 : vector<8x128xf32>
    %29 = math.tanh %28 : vector<8x128xf32>
    %cst_26 = arith.constant 5.000000e-01 : f32
    %30 = vector.broadcast %cst_26 : f32 to vector<8x128xf32>
    %31 = arith.mulf %30, %29 : vector<8x128xf32>
    %cst_27 = arith.constant 5.000000e-01 : f32
    %32 = vector.broadcast %cst_27 : f32 to vector<8x128xf32>
    %33 = arith.addf %31, %32 : vector<8x128xf32>
    %34 = vector.extract_strided_slice %17 {offsets = [0, 256], sizes = [8, 128], strides = [1, 1]} : vector<8x512xf32> to vector<8x128xf32>
    %35 = math.tanh %34 : vector<8x128xf32>
    %36 = vector.extract_strided_slice %17 {offsets = [0, 384], sizes = [8, 128], strides = [1, 1]} : vector<8x512xf32> to vector<8x128xf32>
    %cst_28 = arith.constant 5.000000e-01 : f32
    %37 = vector.broadcast %cst_28 : f32 to vector<8x128xf32>
    %38 = arith.mulf %37, %36 : vector<8x128xf32>
    %39 = math.tanh %38 : vector<8x128xf32>
    %cst_29 = arith.constant 5.000000e-01 : f32
    %40 = vector.broadcast %cst_29 : f32 to vector<8x128xf32>
    %41 = arith.mulf %40, %39 : vector<8x128xf32>
    %cst_30 = arith.constant 5.000000e-01 : f32
    %42 = vector.broadcast %cst_30 : f32 to vector<8x128xf32>
    %43 = arith.addf %41, %42 : vector<8x128xf32>
    %44 = arith.mulf %33, %2 : vector<8x128xf32>
    %45 = arith.mulf %25, %35 : vector<8x128xf32>
    %46 = arith.addf %44, %45 : vector<8x128xf32>
    %47 = math.tanh %46 : vector<8x128xf32>
    %48 = arith.mulf %43, %47 : vector<8x128xf32>
    %cst_31 = arith.constant dense<0.000000e+00> : vector<8x128xf32>
    %49 = tpu.matmul %48, %8, %cst_31 {dimension_numbers = #tpu.dot_dimension_numbers<[1], [0], [0], [1], [0, 0, 1, 1], [], []>} : vector<8x128xf32>, vector<128x128xf32>, vector<8x128xf32> -> vector<8x128xf32>
    %50 = arith.addf %49, %9 : vector<8x128xf32>
    %c0_32 = arith.constant 0 : index
    %c0_33 = arith.constant 0 : index
    %51 = vector.load %arg10[%c0_32, %c0_33] : memref<8x128xf32, #tpu.memory_space<vmem>>, vector<8x128xf32>
    tpu.vector_store %arg10[%c0_32, %c0_33], %50 {strides = array<i32>} : memref<8x128xf32, #tpu.memory_space<vmem>>, vector<8x128xf32>,
    %c0_34 = arith.constant 0 : index
    %c0_35 = arith.constant 0 : index
    %52 = vector.load %arg11[%c0_34, %c0_35] : memref<8x128xf32, #tpu.memory_space<vmem>>, vector<8x128xf32>
    tpu.vector_store %arg11[%c0_34, %c0_35], %48 {strides = array<i32>} : memref<8x128xf32, #tpu.memory_space<vmem>>, vector<8x128xf32>,
    %c0_36 = arith.constant 0 : index
    %c0_37 = arith.constant 0 : index
    %53 = vector.load %arg12[%c0_36, %c0_37] : memref<8x128xf32, #tpu.memory_space<vmem>>, vector<8x128xf32>
    tpu.vector_store %arg12[%c0_36, %c0_37], %46 {strides = array<i32>} : memref<8x128xf32, #tpu.memory_space<vmem>>, vector<8x128xf32>,
    return
  }
}

</mosaic_0001>

<bundles_post_ra>
// kernel: tpu_custom_call.1
= control target key start
LH: loop header
LB: loop body
LE: loop exit
PB: predicated region body
PF: predicated region fallthrough
CT: control target
= control target key end

     0   :  { %18 = vsyncpa [#allocation3], 0  ;;  %s1077_s0 = inlined_call_operand.hbm [shape: f32[8,128], index: 0, kind: input, shape index: {}]   ;;  %s1078_s1 = inlined_call_operand.hbm [shape: f32[8,128], index: 1, kind: input, shape index: {}]   ;;  %s1079_s2 = inlined_call_operand.hbm [shape: f32[8,128], index: 2, kind: input, shape index: {}]   ;;  %s1080_s3 = inlined_call_operand.hbm [shape: f32[128,128], index: 3, kind: input, shape index: {}]   ;;  %s1081_s4 = inlined_call_operand.hbm [shape: f32[8,128], index: 4, kind: input, shape index: {}]   ;;  %s1082_s5 = inlined_call_operand.hbm [shape: f32[128,512], index: 5, kind: input, shape index: {}]   ;;  %s1083_s6 = inlined_call_operand.hbm [shape: f32[128,512], index: 6, kind: input, shape index: {}]   ;;  %s1084_s7 = inlined_call_operand.hbm [shape: f32[8,512], index: 7, kind: input, shape index: {}]   ;;  %s1085_s8 = inlined_call_operand.hbm [shape: f32[128,128], index: 8, kind: input, shape index: {}]   ;;  %s1086_s9 = inlined_call_operand.vmem [shape: f32[8,128], index: 9, kind: input, shape index: {}]   ;;  %s1087_s10 = inlined_call_operand.hbm [shape: f32[8,128], index: 10, kind: output, shape index: {0}]   ;;  %s1088_s11 = inlined_call_operand.hbm [shape: f32[8,128], index: 11, kind: output, shape index: {1}]   ;;  %s1089_s12 = inlined_call_operand.hbm [shape: f32[8,128], index: 12, kind: output, shape index: {2}]  }
   0x1   :  { %19 = vsyncpa [#allocation6], 0 }
   0x2   :  { %20 = vsyncpa [#allocation9], 0 }
   0x3   :  { %21 = vsyncpa [#allocation12], 0 }
   0x4   :  { %22 = vsyncpa [#allocation15], 0 }
   0x5   :  { %23 = vsyncpa [#allocation4], 0  ;;  %s41_s23 = sshll.u32 %s1078_s1, 4  ;;  %s42_s23 = int_to_ptr.hbm [resolvable:$true] %s41_s23 }
   0x6   :  { %24 = vsyncpa [#allocation19], 0  ;;  %s945_s24 = smov [#allocation5]   ;;  %s62_s28 = sshll.u32 %s1080_s3, 4  ;;  %s63_s28 = int_to_ptr.hbm [resolvable:$true] %s62_s28 }
   0x7   :  { %s43_s25 = sshll.u32 %s945_s24, 4  ;;  %s946_s29 = smov [#allocation8]   ;;  %s44_s25 = int_to_ptr.vmem [resolvable:$true] %s43_s25 }
   0x8   :  { %46 = dma.hbm_to_vmem [thread:$0]  %s42_s23, 128, %s44_s25, [#allocation6]  }
   0x9   :  { %s64_s30 = sshll.u32 %s946_s29, 4  ;;  %s947_s13 = smov 128   ;;  %s65_s30 = int_to_ptr.vmem [resolvable:$true] %s64_s30 }
   0xa   :  { %s948_s14 = smov 8   ;;  %s86_s16 = sshll.u32 %s1082_s5, 4  ;;  %s87_s16 = int_to_ptr.hbm [resolvable:$true] %s86_s16 }
   0xb   :  { %70 = dma.hbm_to_vmem [thread:$0]  %s63_s28, 2048, %s65_s30, [#allocation9], %s947_s13, %s947_s13, %s948_s14  }
   0xc   :  { %s949_s17 = smov [#allocation11]   ;;  %s113_s20 = sshll.u32 %s1084_s7, 4  ;;  %s114_s20 = int_to_ptr.hbm [resolvable:$true] %s113_s20 }
   0xd   :  { %s88_s18 = sshll.u32 %s949_s17, 4  ;;  %s950_s21 = smov 512   ;;  %s89_s18 = int_to_ptr.vmem [resolvable:$true] %s88_s18 }
   0xe   :  { %s951_s22 = smov 32   ;;  %s952_s23 = smov [#allocation14]  }
   0xf   :  { %94 = dma.hbm_to_vmem [thread:$0]  %s87_s16, 8192, %s89_s18, [#allocation12], %s950_s21, %s950_s21, %s951_s22  }
  0x10   :  { %s115_s24 = sshll.u32 %s952_s23, 4  ;;  %s30_s5 = sshll.u32 %s1077_s0, 4  ;;  %s116_s24 = int_to_ptr.vmem [resolvable:$true] %s115_s24  ;;  %s31_s5 = int_to_ptr.hbm [resolvable:$true] %s30_s5 }
  0x11   :  { %118 = dma.hbm_to_vmem [thread:$0]  %s114_s20, 512, %s116_s24, [#allocation15]  }
  0x12   :  { %s52_s7 = sshll.u32 %s1079_s2, 4  ;;  %s953_s29 = smov [#allocation2]   ;;  %s53_s7 = int_to_ptr.hbm [resolvable:$true] %s52_s7 }
  0x13   :  { %s32_s30 = sshll.u32 %s953_s29, 4  ;;  %s954_s1 = smov [#allocation7]   ;;  %s33_s30 = int_to_ptr.vmem [resolvable:$true] %s32_s30 }
  0x14   :  { %35 = dma.hbm_to_vmem [thread:$0]  %s31_s5, 128, %s33_s30, [#allocation3]  }
  0x15   :  { %s54_s15 = sshll.u32 %s954_s1, 4  ;;  %s76_s18 = sshll.u32 %s1081_s4, 4  ;;  %s55_s15 = int_to_ptr.vmem [resolvable:$true] %s54_s15  ;;  %s77_s18 = int_to_ptr.hbm [resolvable:$true] %s76_s18 }
  0x16   :  { %57 = dma.hbm_to_vmem [thread:$0]  %s53_s7, 128, %s55_s15, [#allocation6]  }
  0x17   :  { %s99_s19 = sshll.u32 %s1083_s6, 4  ;;  %s955_s20 = smov [#allocation10]   ;;  %s100_s19 = int_to_ptr.hbm [resolvable:$true] %s99_s19 }
  0x18   :  { %s78_s2 = sshll.u32 %s955_s20, 4  ;;  %s956_s23 = smov [#allocation13]   ;;  %s79_s2 = int_to_ptr.vmem [resolvable:$true] %s78_s2 }
  0x19   :  { %81 = dma.hbm_to_vmem [thread:$0]  %s77_s18, 128, %s79_s2, [#allocation9]  }
  0x1a   :  { %s101_s24 = sshll.u32 %s956_s23, 4  ;;  %s123_s5 = sshll.u32 %s1085_s8, 4  ;;  %s102_s24 = int_to_ptr.vmem [resolvable:$true] %s101_s24  ;;  %s124_s5 = int_to_ptr.hbm [resolvable:$true] %s123_s5 }
  0x1b   :  { %107 = dma.hbm_to_vmem [thread:$0]  %s100_s19, 8192, %s102_s24, [#allocation12], %s950_s21, %s950_s21, %s951_s22  }
  0x1c   :  { %s957_s4 = smov [#allocation16]  }
  0x1d   :  { %s125_s27 = sshll.u32 %s957_s4, 4  ;;  %s126_s27 = int_to_ptr.vmem [resolvable:$true] %s125_s27 }
  0x1e   :  { %131 = dma.hbm_to_vmem [thread:$0]  %s124_s5, 2048, %s126_s27, [#allocation15], %s947_s13, %s947_s13, %s948_s14  }
  0x1f   :  { %931 = dma.done.wait [#allocation3], 128  }
  0x20   :  { %932 = vsyncadd [#allocation3], 4294967168 }
  0x21   :  { %933 = dma.done.wait [#allocation6], 256  }
  0x22   :  { %934 = vsyncadd [#allocation6], 4294967040 }
  0x23   :  { %935 = dma.done.wait [#allocation9], 2176  }
  0x24   :  { %936 = vsyncadd [#allocation9], 4294965120 }
  0x25   :  { %937 = dma.done.wait [#allocation12], 16384  }
  0x26   :  { %938 = vsyncadd [#allocation12], 4294950912 }
  0x27   :  { %939 = dma.done.wait [#allocation15], 2560  }
  0x28   :  { %940 = vsyncadd [#allocation15], 4294964736  ;;  %v188_v0 = vld [vmem:[#allocation8 + $0x78] sm:$0xff]  ;;  %v187_v1 = vld [vmem:[#allocation8 + $0x70] sm:$0xff]  ;;  %s958_s6 = smov [#allocation18]   ;;  %s583_s21 = sshll.u32 %s1088_s11, 4  ;;  %s584_s21 = int_to_ptr.hbm [resolvable:$true] %s583_s21 }
  0x29   :  { %339 = vmatpush.msra.mxu0 %v188_v0  ;;  %v186_v2 = vld [vmem:[#allocation8 + $0x68] sm:$0xff]  ;;  %v185_v3 = vld [vmem:[#allocation8 + $0x60] sm:$0xff]  ;;  %v184_v5 = vld [vmem:[#allocation8 + $0x58] sm:$0xff]  ;;  %s581_s8 = sshll.u32 %s958_s6, 4  ;;  %s959_s22 = smov [#allocation20]   ;;  %s582_s8 = int_to_ptr.vmem [resolvable:$true] %s581_s8 }
  0x2a   :  { %v314_v4 = vld [vmem:[#allocation13 + $0x1e0] sm:$0xff]  ;;  %v315_v6 = vld [vmem:[#allocation13 + $0x1e8] sm:$0xff]  ;;  %v316_v7 = vld [vmem:[#allocation13 + $0x1f0] sm:$0xff]  ;;  %s592_s28 = sshll.u32 %s959_s22, 4  ;;  %s594_s30 = sshll.u32 %s1089_s12, 4  ;;  %s593_s28 = int_to_ptr.vmem [resolvable:$true] %s592_s28  ;;  %s595_s30 = int_to_ptr.hbm [resolvable:$true] %s594_s30 }
  0x2b   :  { %340 = vmatpush.msra.mxu0 %v187_v1  ;;  %360 = vmatpush.msra.mxu1 %v314_v4  ;;  %v310_v8 = vld [vmem:[#allocation13 + $0x1c0] sm:$0xff]  ;;  %v311_v9 = vld [vmem:[#allocation13 + $0x1c8] sm:$0xff]  ;;  %v312_v10 = vld [vmem:[#allocation13 + $0x1d0] sm:$0xff]  ;;  %s960_s16 = smov [#allocation17]   ;;  %s572_s0 = sshll.u32 %s1087_s10, 4  ;;  %s573_s0 = int_to_ptr.hbm [resolvable:$true] %s572_s0 }
  0x2c   :  { %380 = vmatpush.msra.mxu2 %v315_v6  ;;  %v183_v11 = vld [vmem:[#allocation8 + $0x50] sm:$0xff]  ;;  %400 = vmatpush.msra.mxu3 %v316_v7  ;;  %v306_v12 = vld [vmem:[#allocation13 + $0x1a0] sm:$0xff]  ;;  %v308_v14 = vld [vmem:[#allocation13 + $0x1b0] sm:$0xff]  ;;  %s570_s11 = sshll.u32 %s960_s16, 4  ;;  %s571_s11 = int_to_ptr.vmem [resolvable:$true] %s570_s11 }
  0x2d   :  { %341 = vmatpush.msra.mxu0 %v186_v2  ;;  %361 = vmatpush.msra.mxu1 %v310_v8  ;;  %v307_v13 = vld [vmem:[#allocation13 + $0x1a8] sm:$0xff]  ;;  %v302_v15 = vld [vmem:[#allocation13 + $0x180] sm:$0xff]  ;;  %v304_v18 = vld [vmem:[#allocation13 + $0x190] sm:$0xff] }
  0x2e   :  { %381 = vmatpush.msra.mxu2 %v311_v9  ;;  %v182_v16 = vld [vmem:[#allocation8 + $0x48] sm:$0xff]  ;;  %401 = vmatpush.msra.mxu3 %v312_v10  ;;  %v303_v17 = vld [vmem:[#allocation13 + $0x188] sm:$0xff]  ;;  %v181_v20 = vld [vmem:[#allocation8 + $0x40] sm:$0xff] }
  0x2f   :  { %342 = vmatpush.msra.mxu0 %v185_v3  ;;  %362 = vmatpush.msra.mxu1 %v306_v12  ;;  %v298_v19 = vld [vmem:[#allocation13 + $0x160] sm:$0xff]  ;;  %v299_v21 = vld [vmem:[#allocation13 + $0x168] sm:$0xff]  ;;  %v300_v22 = vld [vmem:[#allocation13 + $0x170] sm:$0xff] }
  0x30   :  { %382 = vmatpush.msra.mxu2 %v307_v13  ;;  %402 = vmatpush.msra.mxu3 %v308_v14  ;;  %v294_v23 = vld [vmem:[#allocation13 + $0x140] sm:$0xff]  ;;  %v180_v24 = vld [vmem:[#allocation8 + $0x38] sm:$0xff]  ;;  %v295_v25 = vld [vmem:[#allocation13 + $0x148] sm:$0xff] }
  0x31   :  { %343 = vmatpush.msra.mxu0 %v184_v5  ;;  %363 = vmatpush.msra.mxu1 %v302_v15  ;;  %v296_v26 = vld [vmem:[#allocation13 + $0x150] sm:$0xff]  ;;  %v290_v27 = vld [vmem:[#allocation13 + $0x120] sm:$0xff]  ;;  %v179_v28 = vld [vmem:[#allocation8 + $0x30] sm:$0xff] }
  0x32   :  { %383 = vmatpush.msra.mxu2 %v303_v17  ;;  %403 = vmatpush.msra.mxu3 %v304_v18  ;;  %v291_v29 = vld [vmem:[#allocation13 + $0x128] sm:$0xff]  ;;  %v292_v30 = vld [vmem:[#allocation13 + $0x130] sm:$0xff]  ;;  %v286_v31 = vld [vmem:[#allocation13 + $0x100] sm:$0xff] }
  0x33   :  { %344 = vmatpush.msra.mxu0 %v183_v11  ;;  %364 = vmatpush.msra.mxu1 %v298_v19  ;;  %v178_v32 = vld [vmem:[#allocation8 + $0x28] sm:$0xff]  ;;  %v287_v33 = vld [vmem:[#allocation13 + $0x108] sm:$0xff]  ;;  %v288_v34 = vld [vmem:[#allocation13 + $0x110] sm:$0xff] }
  0x34   :  { %384 = vmatpush.msra.mxu2 %v299_v21  ;;  %404 = vmatpush.msra.mxu3 %v300_v22  ;;  %v282_v35 = vld [vmem:[#allocation13 + $0xe0] sm:$0xff]  ;;  %v177_v36 = vld [vmem:[#allocation8 + $0x20] sm:$0xff]  ;;  %v283_v37 = vld [vmem:[#allocation13 + $0xe8] sm:$0xff] }
  0x35   :  { %345 = vmatpush.msra.mxu0 %v182_v16  ;;  %365 = vmatpush.msra.mxu1 %v294_v23  ;;  %v284_v38 = vld [vmem:[#allocation13 + $0xf0] sm:$0xff]  ;;  %v278_v39 = vld [vmem:[#allocation13 + $0xc0] sm:$0xff]  ;;  %v279_v41 = vld [vmem:[#allocation13 + $0xc8] sm:$0xff] }
  0x36   :  { %385 = vmatpush.msra.mxu2 %v295_v25  ;;  %405 = vmatpush.msra.mxu3 %v296_v26  ;;  %v176_v40 = vld [vmem:[#allocation8 + $0x18] sm:$0xff]  ;;  %v274_v43 = vld [vmem:[#allocation13 + $0xa0] sm:$0xff]  ;;  %v175_v44 = vld [vmem:[#allocation8 + $0x10] sm:$0xff] }
  0x37   :  { %346 = vmatpush.msra.mxu0 %v181_v20  ;;  %366 = vmatpush.msra.mxu1 %v290_v27  ;;  %v280_v42 = vld [vmem:[#allocation13 + $0xd0] sm:$0xff]  ;;  %v275_v45 = vld [vmem:[#allocation13 + $0xa8] sm:$0xff]  ;;  %v270_v47 = vld [vmem:[#allocation13 + $0x80] sm:$0xff] }
  0x38   :  { %386 = vmatpush.msra.mxu2 %v291_v29  ;;  %406 = vmatpush.msra.mxu3 %v292_v30  ;;  %v276_v46 = vld [vmem:[#allocation13 + $0xb0] sm:$0xff]  ;;  %v174_v48 = vld [vmem:[#allocation8 + $0x8] sm:$0xff]  ;;  %v271_v49 = vld [vmem:[#allocation13 + $0x88] sm:$0xff] }
  0x39   :  { %347 = vmatpush.msra.mxu0 %v180_v24  ;;  %367 = vmatpush.msra.mxu1 %v286_v31  ;;  %v272_v50 = vld [vmem:[#allocation13 + $0x90] sm:$0xff]  ;;  %v266_v51 = vld [vmem:[#allocation13 + $0x60] sm:$0xff]  ;;  %v173_v52 = vld [vmem:[#allocation8] sm:$0xff] }
  0x3a   :  { %387 = vmatpush.msra.mxu2 %v287_v33  ;;  %407 = vmatpush.msra.mxu3 %v288_v34  ;;  %v267_v53 = vld [vmem:[#allocation13 + $0x68] sm:$0xff]  ;;  %v170_v54 = vld [vmem:[#allocation2] sm:$0xff]  ;;  %v268_v55 = vld [vmem:[#allocation13 + $0x70] sm:$0xff] }
  0x3b   :  { %348 = vmatpush.msra.mxu0 %v179_v28  ;;  %368 = vmatpush.msra.mxu1 %v282_v35  ;;  %v317_v56 = vld [vmem:[#allocation13 + $0x1f8] sm:$0xff]  ;;  %v262_v57 = vld [vmem:[#allocation13 + $0x40] sm:$0xff]  ;;  %v263_v58 = vld [vmem:[#allocation13 + $0x48] sm:$0xff] }
  0x3c   :  { %388 = vmatpush.msra.mxu2 %v283_v37  ;;  %408 = vmatpush.msra.mxu3 %v284_v38  ;;  %v264_v59 = vld [vmem:[#allocation13 + $0x50] sm:$0xff]  ;;  %v313_v60 = vld [vmem:[#allocation13 + $0x1d8] sm:$0xff]  ;;  %v258_v61 = vld [vmem:[#allocation13 + $0x20] sm:$0xff] }
  0x3d   :  { %349 = vmatpush.msra.mxu0 %v178_v32  ;;  %369 = vmatpush.msra.mxu1 %v278_v39  ;;  %v259_v62 = vld [vmem:[#allocation13 + $0x28] sm:$0xff]  ;;  %v260_v63 = vld [vmem:[#allocation13 + $0x30] sm:$0xff]  ;;  %v309_v0 = vld [vmem:[#allocation13 + $0x1b8] sm:$0xff] }
  0x3e   :  { %389 = vmatpush.msra.mxu2 %v279_v41  ;;  %409 = vmatpush.msra.mxu3 %v280_v42  ;;  %v254_v1 = vld [vmem:[#allocation13] sm:$0xff]  ;;  %v255_v2 = vld [vmem:[#allocation13 + $0x8] sm:$0xff]  ;;  %v256_v3 = vld [vmem:[#allocation13 + $0x10] sm:$0xff] }
  0x3f   :  { %350 = vmatpush.msra.mxu0 %v177_v36  ;;  %370 = vmatpush.msra.mxu1 %v274_v43  ;;  %v305_v4 = vld [vmem:[#allocation13 + $0x198] sm:$0xff]  ;;  %v250_v5 = vld [vmem:[#allocation11 + $0x1e0] sm:$0xff]  ;;  %v251_v6 = vld [vmem:[#allocation11 + $0x1e8] sm:$0xff] }
  0x40   :  { %390 = vmatpush.msra.mxu2 %v275_v45  ;;  %410 = vmatpush.msra.mxu3 %v276_v46  ;;  %v252_v7 = vld [vmem:[#allocation11 + $0x1f0] sm:$0xff]  ;;  %v301_v8 = vld [vmem:[#allocation13 + $0x178] sm:$0xff]  ;;  %v246_v9 = vld [vmem:[#allocation11 + $0x1c0] sm:$0xff] }
  0x41   :  { %351 = vmatpush.msra.mxu0 %v176_v40  ;;  %371 = vmatpush.msra.mxu1 %v270_v47  ;;  %v247_v10 = vld [vmem:[#allocation11 + $0x1c8] sm:$0xff]  ;;  %v248_v11 = vld [vmem:[#allocation11 + $0x1d0] sm:$0xff]  ;;  %v297_v12 = vld [vmem:[#allocation13 + $0x158] sm:$0xff] }
  0x42   :  { %391 = vmatpush.msra.mxu2 %v271_v49  ;;  %411 = vmatpush.msra.mxu3 %v272_v50  ;;  %v242_v13 = vld [vmem:[#allocation11 + $0x1a0] sm:$0xff]  ;;  %v243_v14 = vld [vmem:[#allocation11 + $0x1a8] sm:$0xff]  ;;  %v244_v15 = vld [vmem:[#allocation11 + $0x1b0] sm:$0xff] }
  0x43   :  { %352 = vmatpush.msra.mxu0 %v175_v44  ;;  %372 = vmatpush.msra.mxu1 %v266_v51  ;;  %v293_v16 = vld [vmem:[#allocation13 + $0x138] sm:$0xff]  ;;  %v238_v17 = vld [vmem:[#allocation11 + $0x180] sm:$0xff]  ;;  %v239_v18 = vld [vmem:[#allocation11 + $0x188] sm:$0xff] }
  0x44   :  { %392 = vmatpush.msra.mxu2 %v267_v53  ;;  %412 = vmatpush.msra.mxu3 %v268_v55  ;;  %v240_v19 = vld [vmem:[#allocation11 + $0x190] sm:$0xff]  ;;  %v289_v20 = vld [vmem:[#allocation13 + $0x118] sm:$0xff]  ;;  %v234_v21 = vld [vmem:[#allocation11 + $0x160] sm:$0xff] }
  0x45   :  { %353 = vmatpush.msra.mxu0 %v174_v48  ;;  %373 = vmatpush.msra.mxu1 %v262_v57  ;;  %v235_v22 = vld [vmem:[#allocation11 + $0x168] sm:$0xff]  ;;  %v236_v23 = vld [vmem:[#allocation11 + $0x170] sm:$0xff]  ;;  %v285_v24 = vld [vmem:[#allocation13 + $0xf8] sm:$0xff] }
  0x46   :  { %393 = vmatpush.msra.mxu2 %v263_v58  ;;  %413 = vmatpush.msra.mxu3 %v264_v59  ;;  %v230_v25 = vld [vmem:[#allocation11 + $0x140] sm:$0xff]  ;;  %v231_v26 = vld [vmem:[#allocation11 + $0x148] sm:$0xff]  ;;  %v232_v27 = vld [vmem:[#allocation11 + $0x150] sm:$0xff] }
  0x47   :  { %354 = vmatpush.msra.mxu0 %v173_v52  ;;  %374 = vmatpush.msra.mxu1 %v258_v61  ;;  %v281_v28 = vld [vmem:[#allocation13 + $0xd8] sm:$0xff]  ;;  %v226_v29 = vld [vmem:[#allocation11 + $0x120] sm:$0xff]  ;;  %v227_v30 = vld [vmem:[#allocation11 + $0x128] sm:$0xff] }
  0x48   :  { %355 = vmatmul.f32.vlgmr.msra.gmra.mxu0 %v170_v54  ;;  %394 = vmatpush.msra.mxu2 %v259_v62  ;;  %v228_v31 = vld [vmem:[#allocation11 + $0x130] sm:$0xff]  ;;  %v277_v32 = vld [vmem:[#allocation13 + $0xb8] sm:$0xff]  ;;  %v222_v33 = vld [vmem:[#allocation11 + $0x100] sm:$0xff] }
  0x49   :  { %420 = vmatpush.msrb.mxu0 %v317_v56  ;;  %414 = vmatpush.msra.mxu3 %v260_v63  ;;  %v223_v34 = vld [vmem:[#allocation11 + $0x108] sm:$0xff]  ;;  %v224_v35 = vld [vmem:[#allocation11 + $0x110] sm:$0xff]  ;;  %v273_v36 = vld [vmem:[#allocation13 + $0x98] sm:$0xff] }
  0x4a   :  { %375 = vmatpush.msra.mxu1 %v254_v1  ;;  %395 = vmatpush.msra.mxu2 %v255_v2  ;;  %v218_v37 = vld [vmem:[#allocation11 + $0xe0] sm:$0xff]  ;;  %v219_v38 = vld [vmem:[#allocation11 + $0xe8] sm:$0xff]  ;;  %v220_v39 = vld [vmem:[#allocation11 + $0xf0] sm:$0xff] }
  0x4b   :  { %421 = vmatpush.msrb.mxu0 %v313_v60  ;;  %415 = vmatpush.msra.mxu3 %v256_v3  ;;  %v269_v40 = vld [vmem:[#allocation13 + $0x78] sm:$0xff]  ;;  %v214_v41 = vld [vmem:[#allocation11 + $0xc0] sm:$0xff]  ;;  %v215_v42 = vld [vmem:[#allocation11 + $0xc8] sm:$0xff] }
  0x4c   :  { %440 = vmatpush.msrb.mxu1 %v250_v5  ;;  %460 = vmatpush.msrb.mxu2 %v251_v6  ;;  %v216_v43 = vld [vmem:[#allocation11 + $0xd0] sm:$0xff]  ;;  %v265_v44 = vld [vmem:[#allocation13 + $0x58] sm:$0xff]  ;;  %v210_v45 = vld [vmem:[#allocation11 + $0xa0] sm:$0xff] }
  0x4d   :  { %422 = vmatpush.msrb.mxu0 %v309_v0  ;;  %480 = vmatpush.msrb.mxu3 %v252_v7  ;;  %v211_v46 = vld [vmem:[#allocation11 + $0xa8] sm:$0xff]  ;;  %v212_v47 = vld [vmem:[#allocation11 + $0xb0] sm:$0xff]  ;;  %v261_v48 = vld [vmem:[#allocation13 + $0x38] sm:$0xff] }
  0x4e   :  { %441 = vmatpush.msrb.mxu1 %v246_v9  ;;  %461 = vmatpush.msrb.mxu2 %v247_v10  ;;  %v206_v49 = vld [vmem:[#allocation11 + $0x80] sm:$0xff]  ;;  %v207_v50 = vld [vmem:[#allocation11 + $0x88] sm:$0xff]  ;;  %v208_v51 = vld [vmem:[#allocation11 + $0x90] sm:$0xff] }
  0x4f   :  { %423 = vmatpush.msrb.mxu0 %v305_v4  ;;  %481 = vmatpush.msrb.mxu3 %v248_v11  ;;  %v257_v52 = vld [vmem:[#allocation13 + $0x18] sm:$0xff]  ;;  %v171_v53 = vld [vmem:[#allocation5] sm:$0xff]  ;;  %v202_v56 = vld [vmem:[#allocation11 + $0x60] sm:$0xff] }
  0x50   :  { %442 = vmatpush.msrb.mxu1 %v242_v13  ;;  %462 = vmatpush.msrb.mxu2 %v243_v14  ;;  %v253_v54 = vld [vmem:[#allocation11 + $0x1f8] sm:$0xff]  ;;  %v203_v57 = vld [vmem:[#allocation11 + $0x68] sm:$0xff]  ;;  %v204_v58 = vld [vmem:[#allocation11 + $0x70] sm:$0xff] }
  0x51   :  { %424 = vmatpush.msrb.mxu0 %v301_v8  ;;  %482 = vmatpush.msrb.mxu3 %v244_v15  ;;  %v249_v55 = vld [vmem:[#allocation11 + $0x1d8] sm:$0xff]  ;;  %v198_v6 = vld [vmem:[#allocation11 + $0x40] sm:$0xff]  ;;  %v199_v7 = vld [vmem:[#allocation11 + $0x48] sm:$0xff] }
  0x52   :  { %443 = vmatpush.msrb.mxu1 %v238_v17  ;;  %463 = vmatpush.msrb.mxu2 %v239_v18  ;;  %v245_v59 = vld [vmem:[#allocation11 + $0x1b8] sm:$0xff]  ;;  %v200_v8 = vld [vmem:[#allocation11 + $0x50] sm:$0xff]  ;;  %v194_v10 = vld [vmem:[#allocation11 + $0x20] sm:$0xff] }
  0x53   :  { %425 = vmatpush.msrb.mxu0 %v297_v12  ;;  %483 = vmatpush.msrb.mxu3 %v240_v19  ;;  %v241_v60 = vld [vmem:[#allocation11 + $0x198] sm:$0xff]  ;;  %v195_v11 = vld [vmem:[#allocation11 + $0x28] sm:$0xff]  ;;  %v196_v12 = vld [vmem:[#allocation11 + $0x30] sm:$0xff] }
  0x54   :  { %444 = vmatpush.msrb.mxu1 %v234_v21  ;;  %464 = vmatpush.msrb.mxu2 %v235_v22  ;;  %v237_v61 = vld [vmem:[#allocation11 + $0x178] sm:$0xff]  ;;  %v190_v14 = vld [vmem:[#allocation11] sm:$0xff]  ;;  %v191_v15 = vld [vmem:[#allocation11 + $0x8] sm:$0xff] }
  0x55   :  { %426 = vmatpush.msrb.mxu0 %v293_v16  ;;  %484 = vmatpush.msrb.mxu3 %v236_v23  ;;  %v233_v62 = vld [vmem:[#allocation11 + $0x158] sm:$0xff]  ;;  %v192_v16 = vld [vmem:[#allocation11 + $0x10] sm:$0xff] }
  0x56   :  { %445 = vmatpush.msrb.mxu1 %v230_v25  ;;  %465 = vmatpush.msrb.mxu2 %v231_v26  ;;  %v229_v63 = vld [vmem:[#allocation11 + $0x138] sm:$0xff]  ;;  %v336_v23 = vld [vmem:[#allocation16 + $0x70] sm:$0xff]  ;;  %v334_v25 = vld [vmem:[#allocation16 + $0x60] sm:$0xff] }
  0x57   :  { %427 = vmatpush.msrb.mxu0 %v289_v20  ;;  %485 = vmatpush.msrb.mxu3 %v232_v27  ;;  %v225_v0 = vld [vmem:[#allocation11 + $0x118] sm:$0xff]  ;;  %v332_v27 = vld [vmem:[#allocation16 + $0x50] sm:$0xff] }
  0x58   :  { %446 = vmatpush.msrb.mxu1 %v226_v29  ;;  %466 = vmatpush.msrb.mxu2 %v227_v30  ;;  %v221_v1 = vld [vmem:[#allocation11 + $0xf8] sm:$0xff]  ;;  %v330_v29 = vld [vmem:[#allocation16 + $0x40] sm:$0xff] }
  0x59   :  { %428 = vmatpush.msrb.mxu0 %v285_v24  ;;  %486 = vmatpush.msrb.mxu3 %v228_v31  ;;  %v217_v2 = vld [vmem:[#allocation11 + $0xd8] sm:$0xff]  ;;  %v335_v24 = vld [vmem:[#allocation16 + $0x68] sm:$0xff] }
  0x5a   :  { %447 = vmatpush.msrb.mxu1 %v222_v33  ;;  %467 = vmatpush.msrb.mxu2 %v223_v34  ;;  %v213_v3 = vld [vmem:[#allocation11 + $0xb8] sm:$0xff]  ;;  %v327_v33 = vld [vmem:[#allocation16 + $0x28] sm:$0xff] }
  0x5b   :  { %429 = vmatpush.msrb.mxu0 %v281_v28  ;;  %487 = vmatpush.msrb.mxu3 %v224_v35  ;;  %v209_v4 = vld [vmem:[#allocation11 + $0x98] sm:$0xff]  ;;  %v331_v28 = vld [vmem:[#allocation16 + $0x48] sm:$0xff] }
  0x5c   :  { %448 = vmatpush.msrb.mxu1 %v218_v37  ;;  %468 = vmatpush.msrb.mxu2 %v219_v38  ;;  %v205_v5 = vld [vmem:[#allocation11 + $0x78] sm:$0xff] }
  0x5d   :  { %430 = vmatpush.msrb.mxu0 %v277_v32  ;;  %488 = vmatpush.msrb.mxu3 %v220_v39  ;;  %v201_v9 = vld [vmem:[#allocation11 + $0x58] sm:$0xff]  ;;  %v328_v32 = vld [vmem:[#allocation16 + $0x30] sm:$0xff] }
  0x5e   :  { %449 = vmatpush.msrb.mxu1 %v214_v41  ;;  %469 = vmatpush.msrb.mxu2 %v215_v42  ;;  %v197_v13 = vld [vmem:[#allocation11 + $0x38] sm:$0xff]  ;;  %v324_v39 = vld [vmem:[#allocation16 + $0x10] sm:$0xff]  ;;  %v323_v42 = vld [vmem:[#allocation16 + $0x8] sm:$0xff] }
  0x5f   :  { %431 = vmatpush.msrb.mxu0 %v273_v36  ;;  %489 = vmatpush.msrb.mxu3 %v216_v43  ;;  %v193_v17 = vld [vmem:[#allocation11 + $0x18] sm:$0xff]  ;;  %v326_v36 = vld [vmem:[#allocation16 + $0x20] sm:$0xff] }
  0x60   :  { %450 = vmatpush.msrb.mxu1 %v210_v45  ;;  %470 = vmatpush.msrb.mxu2 %v211_v46  ;;  %v189_v18 = vld [vmem:[#allocation10] sm:$0xff] }
  0x61   :  { %432 = vmatpush.msrb.mxu0 %v269_v40  ;;  %490 = vmatpush.msrb.mxu3 %v212_v47  ;;  %v337_v22 = vld [vmem:[#allocation16 + $0x78] sm:$0xff]  ;;  %v318_v40 = vld [vmem:[#allocation14] sm:$0xff] }
  0x62   :  { %451 = vmatpush.msrb.mxu1 %v206_v49  ;;  %471 = vmatpush.msrb.mxu2 %v207_v50  ;;  %v333_v26 = vld [vmem:[#allocation16 + $0x58] sm:$0xff] }
  0x63   :  { %433 = vmatpush.msrb.mxu0 %v265_v44  ;;  %491 = vmatpush.msrb.mxu3 %v208_v51  ;;  %v329_v31 = vld [vmem:[#allocation16 + $0x38] sm:$0xff]  ;;  %v322_v44 = vld [vmem:[#allocation16] sm:$0xff] }
  0x64   :  { %376 = vmatmul.f32.vlgmr.msra.gmra.mxu1 %v171_v53  ;;  %396 = vmatmul.f32.vlgmr.msra.gmra.mxu2 %v171_v53  ;;  %v325_v37 = vld [vmem:[#allocation16 + $0x18] sm:$0xff] }
  0x65   :  { %434 = vmatpush.msrb.mxu0 %v261_v48  ;;  %416 = vmatmul.f32.vlgmr.msra.gmra.mxu3 %v171_v53  ;;  %v319_v48 = vld [vmem:[#allocation14 + $0x8] sm:$0xff] }
  0x66   :  { %452 = vmatpush.msrb.mxu1 %v202_v56  ;;  %472 = vmatpush.msrb.mxu2 %v203_v57 }
  0x67   :  { %435 = vmatpush.msrb.mxu0 %v257_v52  ;;  %492 = vmatpush.msrb.mxu3 %v204_v58 }
  0x68   :  { %436 = vmatmul.f32.vlgmr.msrb.gmra.mxu0 %v171_v53  ;;  %453 = vmatpush.msrb.mxu1 %v198_v6  ;;  %v320_v53 = vld [vmem:[#allocation14 + $0x10] sm:$0xff] }
  0x69   :  { %500 = vmatpush.msra.mxu0 %v253_v54  ;;  %473 = vmatpush.msrb.mxu2 %v199_v7 }
  0x6a   :  { %493 = vmatpush.msrb.mxu3 %v200_v8  ;;  %454 = vmatpush.msrb.mxu1 %v194_v10 }
  0x6b   :  { %501 = vmatpush.msra.mxu0 %v249_v55  ;;  %474 = vmatpush.msrb.mxu2 %v195_v11  ;;  %v321_v55 = vld [vmem:[#allocation14 + $0x18] sm:$0xff] }
  0x6c   :  { %494 = vmatpush.msrb.mxu3 %v196_v12  ;;  %455 = vmatpush.msrb.mxu1 %v190_v14 }
  0x6d   :  { %502 = vmatpush.msra.mxu0 %v245_v59  ;;  %475 = vmatpush.msrb.mxu2 %v191_v15 }
  0x6e   :  { %495 = vmatpush.msrb.mxu3 %v192_v16  ;;  %542 = vmatpush.msra.mxu1 %v337_v22 }
  0x6f   :  { %503 = vmatpush.msra.mxu0 %v241_v60 }
  0x70   :  { %543 = vmatpush.msra.mxu1 %v336_v23 }
  0x71   :  { %504 = vmatpush.msra.mxu0 %v237_v61 }
  0x72   :  { %544 = vmatpush.msra.mxu1 %v335_v24 }
  0x73   :  { %505 = vmatpush.msra.mxu0 %v233_v62 }
  0x74   :  { %545 = vmatpush.msra.mxu1 %v334_v25 }
  0x75   :  { %506 = vmatpush.msra.mxu0 %v229_v63 }
  0x76   :  { %546 = vmatpush.msra.mxu1 %v333_v26 }
  0x77   :  { %507 = vmatpush.msra.mxu0 %v225_v0 }
  0x78   :  { %547 = vmatpush.msra.mxu1 %v332_v27 }
  0x79   :  { %508 = vmatpush.msra.mxu0 %v221_v1 }
  0x7a   :  { %548 = vmatpush.msra.mxu1 %v331_v28 }
  0x7b   :  { %509 = vmatpush.msra.mxu0 %v217_v2 }
  0x7c   :  { %549 = vmatpush.msra.mxu1 %v330_v29 }
  0x7d   :  { %510 = vmatpush.msra.mxu0 %v213_v3  ;;  %v172_v3 = vld [vmem:[#allocation7] sm:$0xff] }
  0x7e   :  { %550 = vmatpush.msra.mxu1 %v329_v31 }
  0x7f   :  { %511 = vmatpush.msra.mxu0 %v209_v4 }
  0x80   :  { %551 = vmatpush.msra.mxu1 %v328_v32 }
  0x81   :  { %512 = vmatpush.msra.mxu0 %v205_v5 }
  0x82   :  { %552 = vmatpush.msra.mxu1 %v327_v33 }
  0x83   :  { %513 = vmatpush.msra.mxu0 %v201_v9 }
  0x84   :  { %553 = vmatpush.msra.mxu1 %v326_v36 }
  0x85   :  { %514 = vmatpush.msra.mxu0 %v197_v13  ;;  %v338_v13 = vld [vmem:[%s1086_s9] sm:$0xff] }
  0x86   :  { %554 = vmatpush.msra.mxu1 %v325_v37 }
  0x87   :  { %515 = vmatpush.msra.mxu0 %v193_v17 }
  0x88   :  { %555 = vmatpush.msra.mxu1 %v324_v39 }
  0x8a   :  { %556 = vmatpush.msra.mxu1 %v323_v42 }
  0x8c   :  { %557 = vmatpush.msra.mxu1 %v322_v44 }
  0xc5   :  { %v356_v19 = vpop.f32.mrf.mxu0 }
  0xc6   :  { %v357_v20 = vadd.f32 %v356_v19, %v189_v18 }
  0xc8   :  { %v359_v21 = vmax.f32 %v357_v20, 0.0 }
  0xca   :  { %456 = vmatmul.f32.vlgmr.msrb.gmra.mxu1 %v359_v21  ;;  %476 = vmatmul.f32.vlgmr.msrb.gmra.mxu2 %v359_v21 }
  0xcb   :  { %496 = vmatmul.f32.vlgmr.msrb.gmra.mxu3 %v359_v21  ;;  %516 = vmatmul.f32.vlgmr.msra.gmra.mxu0 %v359_v21 }
  0xe1   :  { %v377_v30 = vpop.f32.mrf.mxu1 }
  0xe5   :  { %v437_v34 = vpop.f32.mrf.mxu0 }
  0xe7   :  { %v397_v35 = vpop.f32.mrf.mxu2 }
  0xe8   :  { %v417_v38 = vpop.f32.mrf.mxu3 }
 0x147   :  { %v457_v41 = vpop.f32.mrf.mxu1 }
 0x148   :  { %v458_v43 = vadd.f32 %v457_v41, %v377_v30  ;;  %v517_v47 = vpop.f32.mrf.mxu0 }
 0x149   :  { %v518_v52 = vadd.f32 %v517_v47, %v437_v34 }
 0x14a   :  { %v520_v45 = vadd.f32 %v458_v43, %v318_v40 }
 0x14b   :  { %v523_v59 = vadd.f32 %v518_v52, %v321_v55 }
 0x14c   :  { %v524_v46 = vmul.f32 0.5, %v520_v45 }
 0x14d   :  { %v477_v49 = vpop.f32.mrf.mxu2  ;;  %v533_v62 = vmul.f32 0.5, %v523_v59 }
 0x14e   :  { %633 = vtanh.f32 %v524_v46  ;;  %v478_v50 = vadd.f32 %v477_v49, %v397_v35  ;;  %v497_v51 = vpop.f32.mrf.mxu3 }
 0x14f   :  { %v498_v54 = vadd.f32 %v497_v51, %v417_v38 }
 0x150   :  { %v521_v56 = vadd.f32 %v478_v50, %v319_v48 }
 0x151   :  { %v522_v58 = vadd.f32 %v498_v54, %v320_v53 }
 0x152   :  { %v528_v57 = vmul.f32 0.5, %v521_v56 }
 0x154   :  { %v634_v60 = vpop.eup %633  ;;  %635 = vtanh.f32 %v528_v57 }
 0x155   :  { %637 = vtanh.f32 %v522_v58  ;;  %v526_v61 = vmul.f32 0.5, %v634_v60 }
 0x156   :  { %639 = vtanh.f32 %v533_v62 }
 0x157   :  { %v527_v0 = vadd.f32 0.5, %v526_v61 }
 0x15a   :  { %v636_v63 = vpop.eup %635 }
 0x15b   :  { %v530_v1 = vmul.f32 0.5, %v636_v63  ;;  %v638_v2 = vpop.eup %637 }
 0x15c   :  { %v538_v6 = vmul.f32 %v638_v2, %v527_v0  ;;  %v640_v7 = vpop.eup %639 }
 0x15d   :  { %v531_v4 = vadd.f32 0.5, %v530_v1  ;;  %v535_v9 = vmul.f32 0.5, %v640_v7 }
 0x15f   :  { %v537_v5 = vmul.f32 %v531_v4, %v172_v3  ;;  %v536_v10 = vadd.f32 0.5, %v535_v9 }
 0x161   :  { %v539_v8 = vadd.f32 %v538_v6, %v537_v5 }
 0x163   :  { %641 = vtanh.f32 %v539_v8  ;;  %564 = vst [vmem:[#allocation20] sm:$0xff] %v539_v8 }
 0x169   :  { %v642_v11 = vpop.eup %641 }
 0x16a   :  { %v541_v12 = vmul.f32 %v642_v11, %v536_v10 }
 0x16c   :  { %558 = vmatmul.f32.vlgmr.msra.gmra.mxu1 %v541_v12  ;;  %563 = vst [vmem:[#allocation18] sm:$0xff] %v541_v12 }
 0x16d   :  { %586 = dma.vmem_to_hbm [thread:$0]  %s582_s8, 128, %s584_s21, [#allocation19]  }
 0x16e   :  { %597 = dma.vmem_to_hbm [thread:$0]  %s593_s28, 128, %s595_s30, [#allocation19]  }
 0x1e9   :  { %v559_v14 = vpop.f32.mrf.mxu1 }
 0x1ea   :  { %v560_v15 = vadd.f32 %v559_v14, %v338_v13 }
 0x1ec   :  { %562 = vst [vmem:[#allocation17] sm:$0xff] %v560_v15 }
 0x1ed   :  { %575 = dma.vmem_to_hbm [thread:$0]  %s571_s11, 128, %s573_s0, [#allocation4]  }
 0x1ee   :  { %941 = dma.done.wait [#allocation4], 128  }
 0x1ef   :  { %942 = vsyncadd [#allocation4], 4294967168 }
 0x1f0   :  { %943 = dma.done.wait [#allocation19], 256  }
 0x1f1   :  { %944 = vsyncadd [#allocation19], 4294967040 }
 0x1f2   :  { %610 = vsyncpa [#allocation3], 1 }
 0x1f3   :  { %611 = vsyncpa [#allocation6], 1 }
 0x1f4   :  { %612 = vsyncpa [#allocation9], 1 }
 0x1f5   :  { %613 = vsyncpa [#allocation12], 1 }
 0x1f6   :  { %614 = vsyncpa [#allocation15], 1 }
 0x1f7   :  { %615 = vsyncpa [#allocation4], 1 }
 0x1f8   :  { %616 = vsyncpa [#allocation19], 1 }

</bundles_post_ra>
